<compile_context>
chip_gen: v5e
topology: v5e:2x2
jax: 0.10.0
libtpu: 0.0.40
codegen_flags: <defaults>
</compile_context>

<pallas_src>
from math import gcd

import jax
import jax.numpy as jnp
from jax.experimental import pallas as pl
from jax.experimental.pallas import tpu as pltpu


# ----------------------------- kernels --------------------------------------


def _prelu_scalar_kernel(x_ref, a_ref, o_ref):
    """Shared alpha: a_ref is a (1,) f32 scalar in SMEM."""
    x = x_ref[...]
    a = a_ref[0]
    o_ref[...] = jnp.where(x >= 0, x, x * a).astype(o_ref.dtype)


def _prelu_bcast_kernel(x_ref, a_ref, o_ref):
    """Per-channel alpha: a_ref is (tile_rows, 1) or (1, tile_l) and broadcasts."""
    x = x_ref[...]
    a = a_ref[...]
    o_ref[...] = jnp.where(x >= 0, x, x * a).astype(o_ref.dtype)


# ----------------------------- host-side helpers ----------------------------


def _default_block_bytes():
    """Per-generation block budget (feedback: v5e 2 MiB, v6e 4 MiB, v7x ~6 MiB)."""
    try:
        kind = jax.devices()[0].device_kind.lower()
    except Exception:  # pragma: no cover - defensive
        kind = ""
    if "v5 lite" in kind or "v5e" in kind or "v5litepod" in kind:
        return 2 * 1024 * 1024
    if "v7" in kind:
        return 6 * 1024 * 1024
    return 4 * 1024 * 1024


def _choose_tiles(Rv, Lv, itemsize, max_block_bytes, row_multiple=None):
    """Pick a lane-dense (tile_rows, tile_l) block.

    VMEM accounting uses (sub, 128)-padded sizes. Prefers full rows (single
    contiguous HBM DMA per block), shrinking the row count first; splits the
    lane axis into 128-multiples only when one row group exceeds the budget.
    """
    lane = 128
    sub = 8 * max(1, 4 // itemsize)          # sublane tile: 8 f32, 16 bf16, 32 int8

    def pad(v, m):
        return -(-v // m) * m

    row_bytes = pad(Lv, lane) * itemsize     # padded VMEM bytes of one row

    # Whole array fits one block (small tensors).
    if pad(Rv, sub) * row_bytes <= max_block_bytes:
        return Rv, Lv

    # Full rows per block; grid along rows is >= 2 here (good for v7x megacore).
    if sub * row_bytes <= max_block_bytes:
        tile_rows = (max_block_bytes // row_bytes // sub) * sub
        if row_multiple:
            m = sub * row_multiple // gcd(sub, row_multiple)   # lcm(sub, C)
            if tile_rows >= m:
                tile_rows = (tile_rows // m) * m               # grid-invariant alpha
        return tile_rows, Lv

    # A single row group exceeds the budget: split the lane axis into
    # 128-multiples; pl.cdiv + Pallas masking handle a ragged tail block.
    tile_rows = Rv if Rv < sub else sub
    lanes = max(lane, max_block_bytes // (pad(tile_rows, sub) * itemsize))
    tile_l = max(lane, (lanes // lane) * lane)
    return tile_rows, min(tile_l, Lv)


# ----------------------------- forward --------------------------------------


def my_prelu_forward(x_nchw, alpha, *, max_block_bytes=None):
    """Forward pass of MyPReLU (F.prelu) on an NCHW tensor.

    x_nchw: (N, C, H, W) array.
    alpha:  (num_parameters,) array; num_parameters is 1 or C.
    """
    N, C, H, W = x_nchw.shape
    P = alpha.shape[0]
    assert P in (1, C), "num_parameters must be 1 or C"

    dtype = x_nchw.dtype
    itemsize = jnp.dtype(dtype).itemsize
    HW = H * W
    R = N * C

    if max_block_bytes is None:
        max_block_bytes = _default_block_bytes()

    # --- choose a lane-dense free view of the contiguous NCHW tensor --------
    # "col":  (N*C, H*W)  with a per-row alpha column   (requires HW % 128 == 0)
    # "row":  (N, C*H*W)  with a per-lane alpha row     (handles 7x7-style shapes;
    #                                                    aligned whenever HW is)
    # "scalar": shared alpha lives in SMEM; pick whichever view is most lane-dense.
    if P == 1:
        mode = "scalar"
        view = (R, HW) if HW % 128 == 0 else (N, C * HW)
    elif HW % 128 == 0:
        mode, view = "col", (R, HW)
    else:
        mode, view = "row", (N, C * HW)

    Rv, Lv = view
    x2d = x_nchw.reshape(Rv, Lv)             # free view of NCHW (no copy)

    tile_rows, tile_l = _choose_tiles(
        Rv, Lv, itemsize, max_block_bytes,
        row_multiple=C if mode == "col" else None)
    grid = (pl.cdiv(Rv, tile_rows), pl.cdiv(Lv, tile_l))

    x_spec = pl.BlockSpec((tile_rows, tile_l), lambda r, t: (r, t))
    out_spec = pl.BlockSpec((tile_rows, tile_l), lambda r, t: (r, t))

    alpha_f32 = alpha.astype(jnp.float32)    # keep PReLU weight in f32 (PyTorch)

    if mode == "scalar":
        kernel = _prelu_scalar_kernel
        a_arg = alpha_f32.reshape(1)
        a_spec = pl.BlockSpec(memory_space=pltpu.MemorySpace.SMEM)
    elif mode == "col":
        kernel = _prelu_bcast_kernel
        a_arg = jnp.broadcast_to(alpha_f32.reshape(1, C), (N, C)).reshape(R, 1)
        if tile_rows % C == 0:
            # alpha pattern has period C along rows -> same block for every step.
            a_spec = pl.BlockSpec((tile_rows, 1), lambda r, t: (0, 0))
        else:
            a_spec = pl.BlockSpec((tile_rows, 1), lambda r, t: (r, 0))
    else:  # "row"
        kernel = _prelu_bcast_kernel
        a_arg = jnp.repeat(alpha_f32, HW).reshape(1, C * HW)
        a_spec = pl.BlockSpec((1, tile_l), lambda r, t: (0, t))

    y2d = pl.pallas_call(
        kernel,
        out_shape=jax.ShapeDtypeStruct((Rv, Lv), dtype),
        grid_spec=pltpu.PrefetchScalarGridSpec(
            num_scalar_prefetch=0,
            grid=grid,
            in_specs=[x_spec, a_spec],
            out_specs=out_spec),
        compiler_params=pltpu.CompilerParams(
            dimension_semantics=("parallel", "parallel"),
            vmem_limit_bytes=48 * 1024 * 1024),
    )(x2d, a_arg)

    return y2d.reshape(N, C, H, W)           # free view back to NCHW


# ----------------------------- self-test -------------------------------------


if __name__ == "__main__":
    k0, k1 = jax.random.split(jax.random.PRNGKey(0))

    # Small NCHW input consistent with the module.
    N, C, H, W = 2, 4, 16, 16
    x = jax.random.normal(k0, (N, C, H, W), dtype=jnp.float32)

    # Per-channel alpha (num_parameters = C), init=0.25 as in MyPReLU.__init__.
    alpha_c = jnp.full((C,), 0.25, dtype=jnp.float32)
    y_c = jax.block_until_ready(my_prelu_forward(x, alpha_c))
    ref_c = jnp.where(x >= 0, x, x * alpha_c.reshape(1, C, 1, 1))
    assert y_c.shape == x.shape and y_c.dtype == x.dtype
    assert jnp.allclose(y_c, ref_c, atol=1e-6), "mismatch (per-channel alpha)"

    # Shared alpha (num_parameters = 1, the module default) -> SMEM-scalar path.
    alpha_1 = jnp.full((1,), 0.25, dtype=jnp.float32)
    y_1 = jax.block_until_ready(my_prelu_forward(x, alpha_1))
    ref_1 = jnp.where(x >= 0, x, x * 0.25)
    assert jnp.allclose(y_1, ref_1, atol=1e-6), "mismatch (shared alpha)"

    # Non-128-aligned spatial dims (7x7) -> lane-dense (N, C*H*W) path.
    x7 = jax.random.normal(k1, (2, 4, 7, 7), dtype=jnp.float32)
    a7 = jnp.linspace(0.1, 0.4, 4).astype(jnp.float32)
    y7 = jax.block_until_ready(my_prelu_forward(x7, a7))
    ref7 = jnp.where(x7 >= 0, x7, x7 * a7.reshape(1, 4, 1, 1))
    assert jnp.allclose(y7, ref7, atol=1e-6), "mismatch (ragged spatial)"

    print("KERNEL_OK")
</pallas_src>

<mosaic_0001>
module attributes {stable_mosaic.version = 11 : i64} {
  func.func @_prelu_bcast_kernel(%arg0: i32, %arg1: i32, %arg2: memref<8x256xf32, #tpu.memory_space<vmem>>, %arg3: memref<8x1xf32, #tpu.memory_space<vmem>>, %arg4: memref<8x256xf32, #tpu.memory_space<vmem>>) attributes {dimension_semantics = [#tpu.dimension_semantics<parallel>, #tpu.dimension_semantics<parallel>], iteration_bounds = array<i64: 1, 1>, scalar_prefetch = 0 : i64, scratch_operands = 0 : i64, tpu.core_type = #tpu.core_type<tc>, window_params = [{transform_indices = @transform_0, window_bounds = array<i64: 8, 256>}, {pipeline_mode = #tpu.pipeline_mode<synchronous>, transform_indices = @transform_1, window_bounds = array<i64: 8, 1>}, {transform_indices = @transform_2, window_bounds = array<i64: 8, 256>}]} {
    %c0 = arith.constant 0 : index
    %c0_0 = arith.constant 0 : index
    %0 = vector.load %arg2[%c0, %c0_0] : memref<8x256xf32, #tpu.memory_space<vmem>>, vector<8x256xf32>
    %c0_1 = arith.constant 0 : index
    %c0_2 = arith.constant 0 : index
    %1 = vector.load %arg3[%c0_1, %c0_2] : memref<8x1xf32, #tpu.memory_space<vmem>>, vector<8x1xf32>
    %cst = arith.constant 0.000000e+00 : f32
    %2 = vector.broadcast %cst : f32 to vector<8x256xf32>
    %3 = arith.cmpf oge, %0, %2 : vector<8x256xf32>
    %4 = vector.broadcast %1 : vector<8x1xf32> to vector<8x256xf32>
    %5 = arith.mulf %0, %4 : vector<8x256xf32>
    %6 = arith.select %3, %0, %5 : vector<8x256xi1>, vector<8x256xf32>
    %c0_3 = arith.constant 0 : index
    %c0_4 = arith.constant 0 : index
    %7 = vector.load %arg4[%c0_3, %c0_4] : memref<8x256xf32, #tpu.memory_space<vmem>>, vector<8x256xf32>
    tpu.vector_store %arg4[%c0_3, %c0_4], %6 {strides = array<i32>} : memref<8x256xf32, #tpu.memory_space<vmem>>, vector<8x256xf32>,
    return
  }
  func.func @transform_0(%arg0: i32, %arg1: i32) -> (i32, i32) {
    %c0_i32 = arith.constant 0 : i32
    return %arg0, %arg1 : i32, i32
  }
  func.func @transform_1(%arg0: i32, %arg1: i32) -> (i32, i32) {
    %c0_i32 = arith.constant 0 : i32
    %c0_i32_0 = arith.constant 0 : i32
    %c0_i32_1 = arith.constant 0 : i32
    return %c0_i32, %c0_i32_0 : i32, i32
  }
  func.func @transform_2(%arg0: i32, %arg1: i32) -> (i32, i32) {
    %c0_i32 = arith.constant 0 : i32
    return %arg0, %arg1 : i32, i32
  }
}

</mosaic_0001>

<bundles_post_ra>
// kernel: tpu_custom_call.1
= control target key start
LH: loop header
LB: loop body
LE: loop exit
PB: predicated region body
PF: predicated region fallthrough
CT: control target
= control target key end

     0   :  { %7 = vsyncpa [#allocation3], 0  ;;  %s142_s0 = inlined_call_operand.hbm [shape: f32[8,256], index: 0, kind: input, shape index: {}]   ;;  %s143_s1 = inlined_call_operand.vmem [shape: f32[8,1], index: 1, kind: input, shape index: {}]   ;;  %s144_s2 = inlined_call_operand.hbm [shape: f32[8,256], index: 2, kind: output, shape index: {}]  }
   0x1   :  { %8 = vsyncpa [#allocation4], 0  ;;  %s14_s11 = sshll.u32 %s142_s0, 4  ;;  %s115_s12 = smov [#allocation2]   ;;  %s15_s11 = int_to_ptr.hbm [resolvable:$true] %s14_s11 }
   0x2   :  { %s16_s13 = sshll.u32 %s115_s12, 4  ;;  %s17_s13 = int_to_ptr.vmem [resolvable:$true] %s16_s13 }
   0x3   :  { %19 = dma.hbm_to_vmem [thread:$0]  %s15_s11, 256, %s17_s13, [#allocation3]  }
   0x4   :  { %111 = dma.done.wait [#allocation3], 256  }
   0x5   :  { %112 = vsyncadd [#allocation3], 4294967040  ;;  %v116_v0 = vmov 0   ;;  %v28_v1 = vld [vmem:[%s143_s1] sm:$0xff]  ;;  %v27_v3 = vld [vmem:[#allocation2 + $0x8] sm:$0xff]  ;;  %s117_s0 = smov [#allocation5]  }
   0x6   :  { %62 = vset.pattern.permute.xlu0 %v116_v0  ;;  %v26_v2 = vld [vmem:[#allocation2] sm:$0xff]  ;;  %vm30_vm1 = vcmp.ge.f32.partialorder %v27_v3, 0.0  ;;  %s47_s16 = sshll.u32 %s117_s0, 4  ;;  %s49_s19 = sshll.u32 %s144_s2, 4  ;;  %s48_s16 = int_to_ptr.vmem [resolvable:$true] %s47_s16  ;;  %s50_s19 = int_to_ptr.hbm [resolvable:$true] %s49_s19 }
   0x7   :  { %33 = vperm.xlu0 %62, %v28_v1   ;;  %vm29_vm0 = vcmp.ge.f32.partialorder %v26_v2, 0.0 }
  0x79   :  { %v34_v4 = vpop.permute.xlu0 %33 }
  0x7a   :  { %v36_v5 = vmul.f32 %v34_v4, %v26_v2  ;;  %v37_v6 = vmul.f32 %v34_v4, %v27_v3 }
  0x7c   :  { %v38_v7 = vsel %vm29_vm0, %v26_v2, %v36_v5  ;;  %v39_v8 = vsel %vm30_vm1, %v27_v3, %v37_v6 }
  0x7d   :  { %40 = vst [vmem:[#allocation5] sm:$0xff] %v38_v7 }
  0x7e   :  { %41 = vst [vmem:[#allocation5 + $0x8] sm:$0xff] %v39_v8 }
  0x7f   :  { %52 = dma.vmem_to_hbm [thread:$0]  %s48_s16, 256, %s50_s19, [#allocation4]  }
  0x80   :  { %113 = dma.done.wait [#allocation4], 256  }
  0x81   :  { %114 = vsyncadd [#allocation4], 4294967040 }
  0x82   :  { %57 = vsyncpa [#allocation3], 1 }
  0x83   :  { %58 = vsyncpa [#allocation4], 1 }

</bundles_post_ra>
